<compile_context>
chip_gen: v5e
topology: v5e:2x2
jax: 0.10.0
libtpu: 0.0.40
codegen_flags: <defaults>
</compile_context>

<pallas_src>
import functools

import jax
import jax.numpy as jnp
from jax import lax
from jax.experimental import pallas as pl
from jax.experimental.pallas import tpu as pltpu


def _boundary_kernel(x_ref, w1_ref, b1_ref, w2_ref, b2_ref, w3_ref, b3_ref,
                     o_ref, *, k1, k2, t_len):
    """NCT-layout body.

    x_ref:  (Cin, M) block, column m = b*T + t (time-contiguous per batch elem).
    w*_ref: fused weights (Cout, K*Cin); b*_ref: (Cout, 1).
    o_ref:  (2, M) block (lane-dense along time).
    """
    x = x_ref[...].astype(jnp.float32)                           # (Cin, M)
    m_cols = x.shape[-1]

    # Batch-local time index of every column, hoisted once: (1, M).
    t_idx = lax.broadcasted_iota(jnp.int32, (1, m_cols), 1) % t_len

    # Per-offset validity masks (shared by conv1/conv2); taps never bleed
    # across batch boundaries inside the folded block.
    offs = set()
    for k_sz in (k1, k2):
        pad = k_sz // 2
        offs.update(o for o in range(-pad, pad + 1) if o != 0)
    masks = {off: (t_idx + off >= 0) & (t_idx + off < t_len) for off in sorted(offs)}

    def conv_same(h, w_ref, b_ref, k_sz):
        if k_sz == 1:
            hk = h
        else:
            pad = k_sz // 2
            taps = []
            for k in range(k_sz):                     # static python loop (unrolled)
                off = k - pad
                if off == 0:
                    taps.append(h)
                else:
                    # rolled[:, m] = h[:, m + off]  (lane roll; wrap-around is masked)
                    rolled = pltpu.roll(h, (-off) % m_cols, axis=1)
                    taps.append(jnp.where(masks[off], rolled, 0.0))
            hk = jnp.concatenate(taps, axis=0)        # (K*C, M), sublane-aligned slabs
        y = jnp.dot(w_ref[...], hk, preferred_element_type=jnp.float32)
        return y + b_ref[...]

    h1 = jnp.maximum(conv_same(x, w1_ref, b1_ref, k1), 0.0)      # (H, M)
    h2 = jnp.maximum(conv_same(h1, w2_ref, b2_ref, k2), 0.0)     # (H, M)
    # conv3 (kernel size 1): plain matmul, output is naturally (2, M) lane-dense.
    out = jnp.dot(w3_ref[...], h2, preferred_element_type=jnp.float32) + b3_ref[...]
    o_ref[...] = out.astype(o_ref.dtype)


def cnn_boundary_predictor(x, params):
    """x: (B, T, C) float32 -> (B, T, 2) float32."""
    B, T, Cin = x.shape
    w1, b1, w2, b2, w3, b3 = params
    K1, _, H = w1.shape
    K2 = w2.shape[0]
    if K1 % 2 != 1 or K2 % 2 != 1:
        # PyTorch Conv1d with padding=K//2 and even K changes the output length.
        raise ValueError("kernel sizes must be odd for 'same'-length padding")

    # --- host-side layout prep (NCT: channels on sublanes, time on lanes) ---
    x_cm = x.reshape(B * T, Cin).T                 # (Cin, B*T), column m = b*T + t
    w1_f = w1.reshape(K1 * Cin, H).T               # (H, K1*Cin): [o, k*Cin+i] = w1[k,i,o]
    w2_f = w2.reshape(K2 * H, H).T                 # (H, K2*H)
    w3_f = w3.T                                    # (2, H)
    b1_c = b1.reshape(H, 1)
    b2_c = b2.reshape(H, 1)
    b3_c = b3.reshape(2, 1)

    # --- batch folding: Bb whole batch elements (M = Bb*T lane columns) per step ---
    MAX_COLS = 8192
    candidates = [d for d in range(1, B + 1)
                  if B % d == 0 and d * T <= MAX_COLS and (d * T) % 128 == 0]
    multi = [d for d in candidates if B // d >= 2]
    if multi:
        Bb = max(multi)        # biggest lane-aligned block keeping >=2 grid steps (v7x megacore)
    elif candidates:
        Bb = max(candidates)
    else:
        Bb = B                 # full-array block sidesteps the (8,128) tiling rule
    G = B // Bb
    M = Bb * T

    kernel = functools.partial(_boundary_kernel, k1=K1, k2=K2, t_len=T)

    grid_spec = pltpu.PrefetchScalarGridSpec(
        num_scalar_prefetch=0,
        grid=(G,),
        in_specs=[
            pl.BlockSpec((Cin, M), lambda g: (0, g)),          # x (NCT, folded batches)
            pl.BlockSpec((H, K1 * Cin), lambda g: (0, 0)),     # w1 fused
            pl.BlockSpec((H, 1), lambda g: (0, 0)),            # b1
            pl.BlockSpec((H, K2 * H), lambda g: (0, 0)),       # w2 fused
            pl.BlockSpec((H, 1), lambda g: (0, 0)),            # b2
            pl.BlockSpec((2, H), lambda g: (0, 0)),            # w3
            pl.BlockSpec((2, 1), lambda g: (0, 0)),            # b3
        ],
        out_specs=pl.BlockSpec((2, M), lambda g: (0, g)),      # (2, M) lane-dense store
    )

    out_cm = pl.pallas_call(
        kernel,
        out_shape=jax.ShapeDtypeStruct((2, B * T), jnp.float32),
        grid_spec=grid_spec,
        compiler_params=pltpu.CompilerParams(
            dimension_semantics=("parallel",)),
    )(x_cm, w1_f, b1_c, w2_f, b2_c, w3_f, b3_c)

    # Tiny (2, B*T) transpose/reshape back to (B, T, 2) — no padded re-read.
    return out_cm.T.reshape(B, T, 2)


def init_params(key, input_dim, hidden_dim, kernel_size):
    """Deterministic synthetic params. Conv weights stored as (K, Cin, Cout)."""
    ks = jax.random.split(key, 6)
    scale = 0.1
    w1 = scale * jax.random.normal(ks[0], (kernel_size, input_dim, hidden_dim), jnp.float32)
    b1 = scale * jax.random.normal(ks[1], (1, hidden_dim), jnp.float32)
    w2 = scale * jax.random.normal(ks[2], (3, hidden_dim, hidden_dim), jnp.float32)
    b2 = scale * jax.random.normal(ks[3], (1, hidden_dim), jnp.float32)
    w3 = scale * jax.random.normal(ks[4], (hidden_dim, 2), jnp.float32)
    b3 = scale * jax.random.normal(ks[5], (1, 2), jnp.float32)
    return (w1, b1, w2, b2, w3, b3)


def reference_forward(x, params):
    """Pure-JAX reference matching PyTorch Conv1d semantics (NCT layout)."""
    w1, b1, w2, b2, w3, b3 = params

    def conv1d(inp_nct, w_kio, b, pad):
        w_oih = jnp.transpose(w_kio, (2, 1, 0))       # (Cout, Cin, K)
        y = lax.conv_general_dilated(
            inp_nct, w_oih, window_strides=(1,), padding=[(pad, pad)],
            dimension_numbers=("NCH", "OIH", "NCH"))
        return y + b.reshape(1, -1, 1)

    xt = jnp.transpose(x, (0, 2, 1))                  # (B, C, T)
    h = jax.nn.relu(conv1d(xt, w1, b1, w1.shape[0] // 2))
    h = jax.nn.relu(conv1d(h, w2, b2, 1))
    h = conv1d(h, w3.reshape(1, *w3.shape), b3, 0)
    return jnp.transpose(h, (0, 2, 1))                # (B, T, 2)


if __name__ == "__main__":
    B, T = 2, 16
    input_dim, hidden_dim, kernel_size = 8, 32, 5

    key = jax.random.PRNGKey(0)
    kx, kp = jax.random.split(key)
    x = jax.random.normal(kx, (B, T, input_dim), jnp.float32)
    params = init_params(kp, input_dim, hidden_dim, kernel_size)

    out = cnn_boundary_predictor(x, params)
    out = jax.block_until_ready(out)

    ref = reference_forward(x, params)
    assert out.shape == (B, T, 2)
    assert jnp.allclose(out, ref, atol=1e-4, rtol=1e-4), (
        f"max abs diff {jnp.max(jnp.abs(out - ref))}")

    print("KERNEL_OK")
</pallas_src>

<mosaic_0001>
module attributes {stable_mosaic.version = 11 : i64} {
  func.func @_boundary_kernel(%arg0: i32, %arg1: memref<8x32xf32, #tpu.memory_space<vmem>>, %arg2: memref<32x40xf32, #tpu.memory_space<vmem>>, %arg3: memref<32x1xf32, #tpu.memory_space<vmem>>, %arg4: memref<32x96xf32, #tpu.memory_space<vmem>>, %arg5: memref<32x1xf32, #tpu.memory_space<vmem>>, %arg6: memref<2x32xf32, #tpu.memory_space<vmem>>, %arg7: memref<2x1xf32, #tpu.memory_space<vmem>>, %arg8: memref<2x32xf32, #tpu.memory_space<vmem>>) attributes {dimension_semantics = [#tpu.dimension_semantics<parallel>], iteration_bounds = array<i64: 1>, scalar_prefetch = 0 : i64, scratch_operands = 0 : i64, tpu.core_type = #tpu.core_type<tc>, window_params = [{transform_indices = @transform_0, window_bounds = array<i64: 8, 32>}, {pipeline_mode = #tpu.pipeline_mode<synchronous>, transform_indices = @transform_1, window_bounds = array<i64: 32, 40>}, {pipeline_mode = #tpu.pipeline_mode<synchronous>, transform_indices = @transform_2, window_bounds = array<i64: 32, 1>}, {pipeline_mode = #tpu.pipeline_mode<synchronous>, transform_indices = @transform_3, window_bounds = array<i64: 32, 96>}, {pipeline_mode = #tpu.pipeline_mode<synchronous>, transform_indices = @transform_4, window_bounds = array<i64: 32, 1>}, {pipeline_mode = #tpu.pipeline_mode<synchronous>, transform_indices = @transform_5, window_bounds = array<i64: 2, 32>}, {pipeline_mode = #tpu.pipeline_mode<synchronous>, transform_indices = @transform_6, window_bounds = array<i64: 2, 1>}, {transform_indices = @transform_7, window_bounds = array<i64: 2, 32>}]} {
    %c0 = arith.constant 0 : index
    %c0_0 = arith.constant 0 : index
    %0 = vector.load %arg1[%c0, %c0_0] : memref<8x32xf32, #tpu.memory_space<vmem>>, vector<8x32xf32>
    %1 = tpu.iota {dimensions = array<i32: 1>} : vector<1x32xi32>
    %c16_i32 = arith.constant 16 : i32
    %c0_i32 = arith.constant 0 : i32
    %2 = arith.cmpi eq, %c16_i32, %c0_i32 : i32
    %c1_i32 = arith.constant 1 : i32
    %3 = arith.select %2, %c1_i32, %c16_i32 : i32
    %4 = vector.broadcast %3 : i32 to vector<1x32xi32>
    %5 = arith.remsi %1, %4 : vector<1x32xi32>
    %c0_i32_1 = arith.constant 0 : i32
    %6 = vector.broadcast %c0_i32_1 : i32 to vector<1x32xi32>
    %7 = arith.cmpi ne, %5, %6 : vector<1x32xi32>
    %c0_i32_2 = arith.constant 0 : i32
    %8 = vector.broadcast %c0_i32_2 : i32 to vector<1x32xi32>
    %9 = arith.cmpi slt, %5, %8 : vector<1x32xi32>
    %c0_i32_3 = arith.constant 0 : i32
    %10 = arith.cmpi slt, %3, %c0_i32_3 : i32
    %11 = vector.broadcast %10 : i1 to vector<1x32xi1>
    %12 = vector.broadcast %11 : vector<1x32xi1> to vector<1x32xi1>
    %13 = arith.xori %9, %12 : vector<1x32xi1>
    %14 = arith.andi %13, %7 : vector<1x32xi1>
    %15 = vector.broadcast %3 : i32 to vector<1x32xi32>
    %16 = arith.addi %5, %15 : vector<1x32xi32>
    %17 = arith.select %14, %16, %5 : vector<1x32xi1>, vector<1x32xi32>
    %c-2_i32 = arith.constant -2 : i32
    %18 = vector.broadcast %c-2_i32 : i32 to vector<1x32xi32>
    %19 = arith.addi %17, %18 : vector<1x32xi32>
    %c0_i32_4 = arith.constant 0 : i32
    %20 = vector.broadcast %c0_i32_4 : i32 to vector<1x32xi32>
    %21 = arith.cmpi sge, %19, %20 : vector<1x32xi32>
    %c-2_i32_5 = arith.constant -2 : i32
    %22 = vector.broadcast %c-2_i32_5 : i32 to vector<1x32xi32>
    %23 = arith.addi %17, %22 : vector<1x32xi32>
    %c16_i32_6 = arith.constant 16 : i32
    %24 = vector.broadcast %c16_i32_6 : i32 to vector<1x32xi32>
    %25 = arith.cmpi slt, %23, %24 : vector<1x32xi32>
    %26 = arith.andi %21, %25 : vector<1x32xi1>
    %c-1_i32 = arith.constant -1 : i32
    %27 = vector.broadcast %c-1_i32 : i32 to vector<1x32xi32>
    %28 = arith.addi %17, %27 : vector<1x32xi32>
    %c0_i32_7 = arith.constant 0 : i32
    %29 = vector.broadcast %c0_i32_7 : i32 to vector<1x32xi32>
    %30 = arith.cmpi sge, %28, %29 : vector<1x32xi32>
    %c-1_i32_8 = arith.constant -1 : i32
    %31 = vector.broadcast %c-1_i32_8 : i32 to vector<1x32xi32>
    %32 = arith.addi %17, %31 : vector<1x32xi32>
    %c16_i32_9 = arith.constant 16 : i32
    %33 = vector.broadcast %c16_i32_9 : i32 to vector<1x32xi32>
    %34 = arith.cmpi slt, %32, %33 : vector<1x32xi32>
    %35 = arith.andi %30, %34 : vector<1x32xi1>
    %c1_i32_10 = arith.constant 1 : i32
    %36 = vector.broadcast %c1_i32_10 : i32 to vector<1x32xi32>
    %37 = arith.addi %17, %36 : vector<1x32xi32>
    %c0_i32_11 = arith.constant 0 : i32
    %38 = vector.broadcast %c0_i32_11 : i32 to vector<1x32xi32>
    %39 = arith.cmpi sge, %37, %38 : vector<1x32xi32>
    %c1_i32_12 = arith.constant 1 : i32
    %40 = vector.broadcast %c1_i32_12 : i32 to vector<1x32xi32>
    %41 = arith.addi %17, %40 : vector<1x32xi32>
    %c16_i32_13 = arith.constant 16 : i32
    %42 = vector.broadcast %c16_i32_13 : i32 to vector<1x32xi32>
    %43 = arith.cmpi slt, %41, %42 : vector<1x32xi32>
    %44 = arith.andi %39, %43 : vector<1x32xi1>
    %c2_i32 = arith.constant 2 : i32
    %45 = vector.broadcast %c2_i32 : i32 to vector<1x32xi32>
    %46 = arith.addi %17, %45 : vector<1x32xi32>
    %c0_i32_14 = arith.constant 0 : i32
    %47 = vector.broadcast %c0_i32_14 : i32 to vector<1x32xi32>
    %48 = arith.cmpi sge, %46, %47 : vector<1x32xi32>
    %c2_i32_15 = arith.constant 2 : i32
    %49 = vector.broadcast %c2_i32_15 : i32 to vector<1x32xi32>
    %50 = arith.addi %17, %49 : vector<1x32xi32>
    %c16_i32_16 = arith.constant 16 : i32
    %51 = vector.broadcast %c16_i32_16 : i32 to vector<1x32xi32>
    %52 = arith.cmpi slt, %50, %51 : vector<1x32xi32>
    %53 = arith.andi %48, %52 : vector<1x32xi1>
    %c2_i32_17 = arith.constant 2 : i32
    %54 = tpu.dynamic_rotate %0 by %c2_i32_17 dim 1 : vector<8x32xf32>, i32 -> vector<8x32xf32>
    %cst = arith.constant 0.000000e+00 : f32
    %55 = vector.shape_cast %26 : vector<1x32xi1> to vector<1x32xi1>
    %56 = vector.broadcast %55 : vector<1x32xi1> to vector<8x32xi1>
    %57 = vector.broadcast %cst : f32 to vector<8x32xf32>
    %58 = arith.select %56, %54, %57 : vector<8x32xi1>, vector<8x32xf32>
    %c1_i32_18 = arith.constant 1 : i32
    %59 = tpu.dynamic_rotate %0 by %c1_i32_18 dim 1 : vector<8x32xf32>, i32 -> vector<8x32xf32>
    %cst_19 = arith.constant 0.000000e+00 : f32
    %60 = vector.shape_cast %35 : vector<1x32xi1> to vector<1x32xi1>
    %61 = vector.broadcast %60 : vector<1x32xi1> to vector<8x32xi1>
    %62 = vector.broadcast %cst_19 : f32 to vector<8x32xf32>
    %63 = arith.select %61, %59, %62 : vector<8x32xi1>, vector<8x32xf32>
    %c31_i32 = arith.constant 31 : i32
    %64 = tpu.dynamic_rotate %0 by %c31_i32 dim 1 : vector<8x32xf32>, i32 -> vector<8x32xf32>
    %cst_20 = arith.constant 0.000000e+00 : f32
    %65 = vector.shape_cast %44 : vector<1x32xi1> to vector<1x32xi1>
    %66 = vector.broadcast %65 : vector<1x32xi1> to vector<8x32xi1>
    %67 = vector.broadcast %cst_20 : f32 to vector<8x32xf32>
    %68 = arith.select %66, %64, %67 : vector<8x32xi1>, vector<8x32xf32>
    %c30_i32 = arith.constant 30 : i32
    %69 = tpu.dynamic_rotate %0 by %c30_i32 dim 1 : vector<8x32xf32>, i32 -> vector<8x32xf32>
    %cst_21 = arith.constant 0.000000e+00 : f32
    %70 = vector.shape_cast %53 : vector<1x32xi1> to vector<1x32xi1>
    %71 = vector.broadcast %70 : vector<1x32xi1> to vector<8x32xi1>
    %72 = vector.broadcast %cst_21 : f32 to vector<8x32xf32>
    %73 = arith.select %71, %69, %72 : vector<8x32xi1>, vector<8x32xf32>
    %74 = tpu.concatenate %58, %63, %0, %68, %73 in 0 : vector<8x32xf32>, vector<8x32xf32>, vector<8x32xf32>, vector<8x32xf32>, vector<8x32xf32> -> vector<40x32xf32>
    %c0_22 = arith.constant 0 : index
    %c0_23 = arith.constant 0 : index
    %75 = vector.load %arg2[%c0_22, %c0_23] : memref<32x40xf32, #tpu.memory_space<vmem>>, vector<32x40xf32>
    %cst_24 = arith.constant dense<0.000000e+00> : vector<32x32xf32>
    %76 = tpu.matmul %75, %74, %cst_24 {dimension_numbers = #tpu.dot_dimension_numbers<[1], [0], [0], [1], [0, 0, 1, 1], [], []>} : vector<32x40xf32>, vector<40x32xf32>, vector<32x32xf32> -> vector<32x32xf32>
    %c0_25 = arith.constant 0 : index
    %c0_26 = arith.constant 0 : index
    %77 = vector.load %arg3[%c0_25, %c0_26] : memref<32x1xf32, #tpu.memory_space<vmem>>, vector<32x1xf32>
    %78 = vector.broadcast %77 : vector<32x1xf32> to vector<32x32xf32>
    %79 = arith.addf %76, %78 : vector<32x32xf32>
    %cst_27 = arith.constant 0.000000e+00 : f32
    %80 = vector.broadcast %cst_27 : f32 to vector<32x32xf32>
    %81 = arith.maximumf %79, %80 : vector<32x32xf32>
    %c1_i32_28 = arith.constant 1 : i32
    %82 = tpu.dynamic_rotate %81 by %c1_i32_28 dim 1 : vector<32x32xf32>, i32 -> vector<32x32xf32>
    %cst_29 = arith.constant 0.000000e+00 : f32
    %83 = vector.shape_cast %35 : vector<1x32xi1> to vector<1x32xi1>
    %84 = vector.broadcast %83 : vector<1x32xi1> to vector<32x32xi1>
    %85 = vector.broadcast %cst_29 : f32 to vector<32x32xf32>
    %86 = arith.select %84, %82, %85 : vector<32x32xi1>, vector<32x32xf32>
    %c31_i32_30 = arith.constant 31 : i32
    %87 = tpu.dynamic_rotate %81 by %c31_i32_30 dim 1 : vector<32x32xf32>, i32 -> vector<32x32xf32>
    %cst_31 = arith.constant 0.000000e+00 : f32
    %88 = vector.shape_cast %44 : vector<1x32xi1> to vector<1x32xi1>
    %89 = vector.broadcast %88 : vector<1x32xi1> to vector<32x32xi1>
    %90 = vector.broadcast %cst_31 : f32 to vector<32x32xf32>
    %91 = arith.select %89, %87, %90 : vector<32x32xi1>, vector<32x32xf32>
    %92 = tpu.concatenate %86, %81, %91 in 0 : vector<32x32xf32>, vector<32x32xf32>, vector<32x32xf32> -> vector<96x32xf32>
    %c0_32 = arith.constant 0 : index
    %c0_33 = arith.constant 0 : index
    %93 = vector.load %arg4[%c0_32, %c0_33] : memref<32x96xf32, #tpu.memory_space<vmem>>, vector<32x96xf32>
    %cst_34 = arith.constant dense<0.000000e+00> : vector<32x32xf32>
    %94 = tpu.matmul %93, %92, %cst_34 {dimension_numbers = #tpu.dot_dimension_numbers<[1], [0], [0], [1], [0, 0, 1, 1], [], []>} : vector<32x96xf32>, vector<96x32xf32>, vector<32x32xf32> -> vector<32x32xf32>
    %c0_35 = arith.constant 0 : index
    %c0_36 = arith.constant 0 : index
    %95 = vector.load %arg5[%c0_35, %c0_36] : memref<32x1xf32, #tpu.memory_space<vmem>>, vector<32x1xf32>
    %96 = vector.broadcast %95 : vector<32x1xf32> to vector<32x32xf32>
    %97 = arith.addf %94, %96 : vector<32x32xf32>
    %cst_37 = arith.constant 0.000000e+00 : f32
    %98 = vector.broadcast %cst_37 : f32 to vector<32x32xf32>
    %99 = arith.maximumf %97, %98 : vector<32x32xf32>
    %c0_38 = arith.constant 0 : index
    %c0_39 = arith.constant 0 : index
    %100 = vector.load %arg6[%c0_38, %c0_39] : memref<2x32xf32, #tpu.memory_space<vmem>>, vector<2x32xf32>
    %cst_40 = arith.constant dense<0.000000e+00> : vector<2x32xf32>
    %101 = tpu.matmul %100, %99, %cst_40 {dimension_numbers = #tpu.dot_dimension_numbers<[1], [0], [0], [1], [0, 0, 1, 1], [], []>} : vector<2x32xf32>, vector<32x32xf32>, vector<2x32xf32> -> vector<2x32xf32>
    %c0_41 = arith.constant 0 : index
    %c0_42 = arith.constant 0 : index
    %102 = vector.load %arg7[%c0_41, %c0_42] : memref<2x1xf32, #tpu.memory_space<vmem>>, vector<2x1xf32>
    %103 = vector.broadcast %102 : vector<2x1xf32> to vector<2x32xf32>
    %104 = arith.addf %101, %103 : vector<2x32xf32>
    %c0_43 = arith.constant 0 : index
    %c0_44 = arith.constant 0 : index
    %105 = vector.load %arg8[%c0_43, %c0_44] : memref<2x32xf32, #tpu.memory_space<vmem>>, vector<2x32xf32>
    tpu.vector_store %arg8[%c0_43, %c0_44], %104 {strides = array<i32>} : memref<2x32xf32, #tpu.memory_space<vmem>>, vector<2x32xf32>,
    return
  }
  func.func @transform_0(%arg0: i32) -> (i32, i32) {
    %c0_i32 = arith.constant 0 : i32
    %c0_i32_0 = arith.constant 0 : i32
    return %c0_i32, %arg0 : i32, i32
  }
  func.func @transform_1(%arg0: i32) -> (i32, i32) {
    %c0_i32 = arith.constant 0 : i32
    %c0_i32_0 = arith.constant 0 : i32
    %c0_i32_1 = arith.constant 0 : i32
    return %c0_i32, %c0_i32_0 : i32, i32
  }
  func.func @transform_2(%arg0: i32) -> (i32, i32) {
    %c0_i32 = arith.constant 0 : i32
    %c0_i32_0 = arith.constant 0 : i32
    %c0_i32_1 = arith.constant 0 : i32
    return %c0_i32, %c0_i32_0 : i32, i32
  }
  func.func @transform_3(%arg0: i32) -> (i32, i32) {
    %c0_i32 = arith.constant 0 : i32
    %c0_i32_0 = arith.constant 0 : i32
    %c0_i32_1 = arith.constant 0 : i32
    return %c0_i32, %c0_i32_0 : i32, i32
  }
  func.func @transform_4(%arg0: i32) -> (i32, i32) {
    %c0_i32 = arith.constant 0 : i32
    %c0_i32_0 = arith.constant 0 : i32
    %c0_i32_1 = arith.constant 0 : i32
    return %c0_i32, %c0_i32_0 : i32, i32
  }
  func.func @transform_5(%arg0: i32) -> (i32, i32) {
    %c0_i32 = arith.constant 0 : i32
    %c0_i32_0 = arith.constant 0 : i32
    %c0_i32_1 = arith.constant 0 : i32
    return %c0_i32, %c0_i32_0 : i32, i32
  }
  func.func @transform_6(%arg0: i32) -> (i32, i32) {
    %c0_i32 = arith.constant 0 : i32
    %c0_i32_0 = arith.constant 0 : i32
    %c0_i32_1 = arith.constant 0 : i32
    return %c0_i32, %c0_i32_0 : i32, i32
  }
  func.func @transform_7(%arg0: i32) -> (i32, i32) {
    %c0_i32 = arith.constant 0 : i32
    %c0_i32_0 = arith.constant 0 : i32
    return %c0_i32, %arg0 : i32, i32
  }
}

</mosaic_0001>

<bundles_post_ra>
// kernel: tpu_custom_call.1
= control target key start
LH: loop header
LB: loop body
LE: loop exit
PB: predicated region body
PF: predicated region fallthrough
CT: control target
= control target key end

     0   :  { %12 = vsyncpa [#allocation3], 0  ;;  %s652_s0 = inlined_call_operand.hbm [shape: f32[8,32], index: 0, kind: input, shape index: {}]   ;;  %s653_s1 = inlined_call_operand.vmem [shape: f32[32,40], index: 1, kind: input, shape index: {}]   ;;  %s654_s2 = inlined_call_operand.vmem [shape: f32[32,1], index: 2, kind: input, shape index: {}]   ;;  %s655_s3 = inlined_call_operand.vmem [shape: f32[32,96], index: 3, kind: input, shape index: {}]   ;;  %s656_s4 = inlined_call_operand.vmem [shape: f32[32,1], index: 4, kind: input, shape index: {}]   ;;  %s657_s5 = inlined_call_operand.vmem [shape: f32[2,32], index: 5, kind: input, shape index: {}]   ;;  %s658_s6 = inlined_call_operand.vmem [shape: f32[2,1], index: 6, kind: input, shape index: {}]   ;;  %s659_s7 = inlined_call_operand.hbm [shape: f32[2,32], index: 7, kind: output, shape index: {}]  }
   0x1   :  { %13 = vsyncpa [#allocation4], 0  ;;  %s19_s26 = sshll.u32 %s652_s0, 4  ;;  %s458_s27 = smov [#allocation2]   ;;  %s20_s26 = int_to_ptr.hbm [resolvable:$true] %s19_s26 }
   0x2   :  { %s21_s28 = sshll.u32 %s458_s27, 4  ;;  %s22_s28 = int_to_ptr.vmem [resolvable:$true] %s21_s28 }
   0x3   :  { %24 = dma.hbm_to_vmem [thread:$0]  %s20_s26, 128, %s22_s28, [#allocation3]  }
   0x4   :  { %454 = dma.done.wait [#allocation3], 128  }
   0x5   :  { %455 = vsyncadd [#allocation3], 4294967168  ;;  %v41_v0 = vld [vmem:[#allocation2] sm:$0xff]  ;;  %s459_s29 = smov 32   ;;  %vm72_vm0 = vcmask 1047808   ;;  %s460_s0 = smov 97   ;;  %v42_v5 = vlaneseq }
   0x6   :  { %73 = vrot.lane.b32.xlu0 %v41_v0, %s459_s29  ;;  %s461_s30 = smov 126   ;;  %s462_s8 = smov 98   ;;  %v110_v6 = vld [vmem:[%s654_s2 + $0x10] sm:$0xff]  ;;  %v464_v7 = vmov 0   ;;  %v108_v10 = vld [vmem:[%s654_s2] sm:$0xff]  ;;  %v111_v18 = vld [vmem:[%s654_s2 + $0x18] sm:$0xff] }
   0x7   :  { %s463_s9 = smov 127   ;;  %404 = vset.pattern.permute.xlu1 %v464_v7  ;;  %403 = vset.pattern.permute.xlu0 %v464_v7  ;;  %v43_v8 = vand.u32 127, %v42_v5  ;;  %v109_v19 = vld [vmem:[%s654_s2 + $0x8] sm:$0xff]  ;;  %v104_v20 = vld [vmem:[%s653_s1] sm:$0xff]  ;;  %vm132_vm5 = vcmask 326656   ;;  %v106_v23 = vld [vmem:[%s653_s1 + $0x10] sm:$0xff] }
   0x8   :  { %405 = vset.pattern.permute.xlu2 %v464_v7  ;;  %v105_v22 = vld [vmem:[%s653_s1 + $0x8] sm:$0xff]  ;;  %v107_v24 = vld [vmem:[%s653_s1 + $0x18] sm:$0xff]  ;;  %v244_v58 = vld [vmem:[%s656_s4 + $0x10] sm:$0xff]  ;;  %vm266_vm6 = vcmask 785408   ;;  %vm319_vm7 = vcmask 261120   ;;  %s465_s17 = smov [#allocation5]  }
   0x9   :  { %v48_v9 = vand.u32 15, %v43_v8  ;;  %v245_v57 = vld [vmem:[%s656_s4 + $0x18] sm:$0xff]  ;;  %v242_v59 = vld [vmem:[%s656_s4] sm:$0xff]  ;;  %v243_v61 = vld [vmem:[%s656_s4 + $0x8] sm:$0xff]  ;;  %s350_s18 = sshll.u32 %s465_s17, 4  ;;  %s352_s20 = sshll.u32 %s659_s7, 4  ;;  %s351_s18 = int_to_ptr.vmem [resolvable:$true] %s350_s18  ;;  %s353_s20 = int_to_ptr.hbm [resolvable:$true] %s352_s20 }
   0xa   :  { %v313_v60 = vld [vmem:[%s658_s6] sm:$0x3]  ;;  %v239_v8 = vld [vmem:[%s655_s3 + $0x8] sm:$0xff]  ;;  %vm343_vm8 = vcmask 254976  }
   0xb   :  { %v68_v11 = vadd.s32 2, %v48_v9  ;;  %v521_v13 = vadd.s32 1, %v48_v9  ;;  %v523_v15 = vadd.s32 4294967295, %v48_v9  ;;  %v56_v17 = vadd.s32 4294967294, %v48_v9  ;;  %v238_v5 = vld [vmem:[%s655_s3] sm:$0xff]  ;;  %v241_v9 = vld [vmem:[%s655_s3 + $0x18] sm:$0xff] }
   0xd   :  { %vm70_vm1 = vcmp.lt.s32.totalorder %v68_v11, 16  ;;  %vm66_vm2 = vcmp.lt.s32.totalorder %v521_v13, 16  ;;  %vm61_vm3 = vcmp.ge.s32.totalorder %v523_v15, 0  ;;  %vm57_vm4 = vcmp.ge.s32.totalorder %v56_v17, 0 }
  0x78   :  { %v74_v1 = vpop.permute.xlu0 %73 }
  0x79   :  { %v75_v2 = vsel %vm72_vm0, %v74_v1, %v41_v0 }
  0x7a   :  { %76 = vrot.lane.b32.xlu0 %v75_v2, %s459_s29 }
  0x82   :  { %129 = vperm.xlu0 %403, %v111_v18  }
  0xec   :  { %v77_v3 = vpop.permute.xlu0 %76 }
  0xed   :  { %v78_v4 = vsel %vm72_vm0, %v77_v3, %v41_v0 }
  0xee   :  { %88 = vrot.lane.b32.xlu2 %v78_v4, %s460_s0  ;;  %100 = vrot.lane.b32.xlu1 %v78_v4, %s461_s30 }
  0xf4   :  { %v130_v34 = vpop.permute.xlu0 %129 }
  0xf6   :  { %82 = vrot.lane.b32.xlu2 %v78_v4, %s462_s8  ;;  %94 = vrot.lane.b32.xlu1 %v78_v4, %s463_s9 }
  0xfe   :  { %124 = vperm.xlu1 %404, %v110_v6   ;;  %119 = vperm.xlu2 %405, %v109_v19   ;;  %v240_v6 = vld [vmem:[%s655_s3 + $0x10] sm:$0xff] }
 0x106   :  { %114 = vperm.xlu1 %404, %v108_v10  }
 0x148   :  { %v89_v14 = vpop.permute.xlu2 %88 }
 0x150   :  { %v83_v21 = vpop.permute.xlu2 %82 }
 0x158   :  { %v120_v26 = vpop.permute.xlu2 %119 }
 0x160   :  { %v101_v12 = vpop.permute.xlu1 %100 }
 0x161   :  { %362 = vmatpush.msk.msra.mxu0 %vm70_vm1, %v101_v12 }
 0x168   :  { %v95_v16 = vpop.permute.xlu1 %94 }
 0x169   :  { %363 = vmatpush.msk.msra.mxu0 %vm66_vm2, %v95_v16 }
 0x16b   :  { %158 = vmatpush.msra.mxu0 %v41_v0 }
 0x16d   :  { %364 = vmatpush.msk.msra.mxu0 %vm61_vm3, %v89_v14 }
 0x16f   :  { %365 = vmatpush.msk.msra.mxu0 %vm57_vm4, %v83_v21 }
 0x170   :  { %366 = vmatmul.msk.f32.vlgmr.msra.gmra.mxu0 %vm132_vm5, %v104_v20  ;;  %v125_v30 = vpop.permute.xlu1 %124 }
 0x178   :  { %367 = vmatmul.msk.f32.gmra.mxu0 %vm132_vm5, %v105_v22  ;;  %v115_v38 = vpop.permute.xlu1 %114 }
 0x180   :  { %368 = vmatmul.msk.f32.gmra.mxu0 %vm132_vm5, %v106_v23 }
 0x188   :  { %369 = vmatmul.msk.f32.gmra.mxu0 %vm132_vm5, %v107_v24 }
 0x1ed   :  { %v162_v25 = vpop.f32.mrf.mxu0 }
 0x1ee   :  { %v163_v39 = vadd.f32 %v162_v25, %v115_v38 }
 0x1f0   :  { %v174_v40 = vmax.f32 %v163_v39, 0.0 }
 0x1f5   :  { %v165_v27 = vpop.f32.mrf.mxu0 }
 0x1f6   :  { %v166_v28 = vadd.f32 %v165_v27, %v120_v26  ;;  %v312_v26 = vld [vmem:[%s657_s5] sm:$0x3] }
 0x1f8   :  { %v549_v29 = vmax.f32 %v166_v28, 0.0 }
 0x1fa   :  { %181 = vrot.lane.b32.xlu1 %v549_v29, %s459_s29 }
 0x1fd   :  { %v168_v31 = vpop.f32.mrf.mxu0 }
 0x1fe   :  { %v169_v32 = vadd.f32 %v168_v31, %v125_v30 }
 0x200   :  { %v553_v33 = vmax.f32 %v169_v32, 0.0 }
 0x202   :  { %184 = vrot.lane.b32.xlu0 %v553_v33, %s459_s29 }
 0x205   :  { %v171_v35 = vpop.f32.mrf.mxu0 }
 0x206   :  { %v172_v36 = vadd.f32 %v171_v35, %v130_v34 }
 0x208   :  { %v177_v37 = vmax.f32 %v172_v36, 0.0 }
 0x20a   :  { %187 = vrot.lane.b32.xlu2 %v177_v37, %s459_s29 }
 0x212   :  { %178 = vrot.lane.b32.xlu2 %v174_v40, %s459_s29 }
 0x264   :  { %v188_v41 = vpop.permute.xlu2 %187 }
 0x265   :  { %v189_v42 = vsel %vm72_vm0, %v188_v41, %v177_v37 }
 0x266   :  { %196 = vrot.lane.b32.xlu0 %v189_v42, %s459_s29 }
 0x26c   :  { %v182_v43 = vpop.permute.xlu1 %181  ;;  %v179_v44 = vpop.permute.xlu2 %178 }
 0x26d   :  { %v183_v45 = vsel %vm72_vm0, %v182_v43, %v549_v29  ;;  %v180_v46 = vsel %vm72_vm0, %v179_v44, %v174_v40 }
 0x26e   :  { %192 = vrot.lane.b32.xlu2 %v183_v45, %s459_s29  ;;  %190 = vrot.lane.b32.xlu0 %v180_v46, %s459_s29 }
 0x274   :  { %v185_v47 = vpop.permute.xlu0 %184 }
 0x275   :  { %v186_v48 = vsel %vm72_vm0, %v185_v47, %v553_v33 }
 0x276   :  { %194 = vrot.lane.b32.xlu1 %v186_v48, %s459_s29 }
 0x2c8   :  { %v193_v49 = vpop.permute.xlu2 %192 }
 0x2c9   :  { %v199_v50 = vsel %vm72_vm0, %v193_v49, %v549_v29 }
 0x2ca   :  { %224 = vrot.lane.b32.xlu0 %v199_v50, %s463_s9 }
 0x2d8   :  { %v197_v51 = vpop.permute.xlu0 %196 }
 0x2d9   :  { %v201_v52 = vsel %vm72_vm0, %v197_v51, %v177_v37 }
 0x2da   :  { %228 = vrot.lane.b32.xlu1 %v201_v52, %s463_s9 }
 0x2e0   :  { %v191_v53 = vpop.permute.xlu0 %190 }
 0x2e1   :  { %v198_v54 = vsel %vm72_vm0, %v191_v53, %v174_v40 }
 0x2e2   :  { %222 = vrot.lane.b32.xlu1 %v198_v54, %s463_s9 }
 0x2e8   :  { %v195_v55 = vpop.permute.xlu1 %194 }
 0x2e9   :  { %v200_v56 = vsel %vm72_vm0, %v195_v55, %v553_v33 }
 0x2ea   :  { %210 = vrot.lane.b32.xlu0 %v200_v56, %s460_s0  ;;  %226 = vrot.lane.b32.xlu2 %v200_v56, %s463_s9 }
 0x2eb   :  { %208 = vrot.lane.b32.xlu1 %v199_v50, %s460_s0 }
 0x2f2   :  { %263 = vperm.xlu0 %403, %v245_v57   ;;  %212 = vrot.lane.b32.xlu2 %v201_v52, %s460_s0 }
 0x2f3   :  { %258 = vperm.xlu1 %404, %v244_v58  }
 0x2fa   :  { %248 = vperm.xlu0 %403, %v242_v59   ;;  %206 = vrot.lane.b32.xlu2 %v198_v54, %s460_s0 }
 0x2fb   :  { %316 = vperm.xlu1 %404, %v313_v60  }
 0x302   :  { %253 = vperm.xlu2 %405, %v243_v61  }
 0x33c   :  { %v225_v0 = vpop.permute.xlu0 %224 }
 0x344   :  { %v227_v63 = vpop.permute.xlu2 %226 }
 0x34c   :  { %v229_v62 = vpop.permute.xlu1 %228  ;;  %v213_v2 = vpop.permute.xlu2 %212 }
 0x34d   :  { %370 = vmatpush.msk.msra.mxu1 %vm66_vm2, %v229_v62  ;;  %383 = vmatpush.msk.msra.mxu3 %vm66_vm2, %v229_v62 }
 0x34f   :  { %371 = vmatpush.msk.msra.mxu1 %vm66_vm2, %v227_v63  ;;  %384 = vmatpush.msk.msra.mxu3 %vm66_vm2, %v227_v63 }
 0x351   :  { %372 = vmatpush.msk.msra.mxu1 %vm66_vm2, %v225_v0  ;;  %385 = vmatpush.msk.msra.mxu3 %vm66_vm2, %v225_v0 }
 0x354   :  { %v223_v1 = vpop.permute.xlu1 %222  ;;  %v207_v7 = vpop.permute.xlu2 %206 }
 0x355   :  { %373 = vmatpush.msk.msra.mxu1 %vm66_vm2, %v223_v1  ;;  %386 = vmatpush.msk.msra.mxu3 %vm66_vm2, %v223_v1 }
 0x357   :  { %287 = vmatpush.msra.mxu1 %v177_v37  ;;  %387 = vmatpush.msra.mxu3 %v177_v37 }
 0x359   :  { %288 = vmatpush.msra.mxu1 %v553_v33  ;;  %388 = vmatpush.msra.mxu3 %v553_v33 }
 0x35b   :  { %289 = vmatpush.msra.mxu1 %v549_v29  ;;  %389 = vmatpush.msra.mxu3 %v549_v29 }
 0x35c   :  { %v211_v3 = vpop.permute.xlu0 %210  ;;  %v254_v18 = vpop.permute.xlu2 %253 }
 0x35d   :  { %290 = vmatpush.msra.mxu1 %v174_v40  ;;  %390 = vmatpush.msra.mxu3 %v174_v40  ;;  %v209_v4 = vpop.permute.xlu1 %208 }
 0x35f   :  { %374 = vmatpush.msk.msra.mxu1 %vm61_vm3, %v213_v2  ;;  %391 = vmatpush.msk.msra.mxu3 %vm61_vm3, %v213_v2 }
 0x361   :  { %375 = vmatpush.msk.msra.mxu1 %vm61_vm3, %v211_v3  ;;  %392 = vmatpush.msk.msra.mxu3 %vm61_vm3, %v211_v3 }
 0x363   :  { %376 = vmatpush.msk.msra.mxu1 %vm61_vm3, %v209_v4  ;;  %393 = vmatpush.msk.msra.mxu3 %vm61_vm3, %v209_v4 }
 0x364   :  { %v264_v12 = vpop.permute.xlu0 %263 }
 0x365   :  { %377 = vmatpush.msk.msra.mxu1 %vm61_vm3, %v207_v7  ;;  %394 = vmatpush.msk.msra.mxu3 %vm61_vm3, %v207_v7  ;;  %v259_v13 = vpop.permute.xlu1 %258 }
 0x366   :  { %378 = vmatmul.msk.f32.vlgmr.msra.gmra.mxu1 %vm266_vm6, %v238_v5  ;;  %380 = vmatmul.msk.f32.vlgmr.msra.gmra.mxu3 %vm266_vm6, %v240_v6 }
 0x36c   :  { %v249_v21 = vpop.permute.xlu0 %248 }
 0x36d   :  { %v317_v27 = vpop.permute.xlu1 %316 }
 0x36e   :  { %379 = vmatmul.msk.f32.gmra.mxu1 %vm266_vm6, %v239_v8  ;;  %381 = vmatmul.msk.f32.gmra.mxu3 %vm266_vm6, %v241_v9 }
 0x3e3   :  { %v296_v10 = vpop.f32.mrf.mxu1 }
 0x3e4   :  { %v297_v22 = vadd.f32 %v296_v10, %v249_v21 }
 0x3e6   :  { %v308_v25 = vmax.f32 %v297_v22, 0.0 }
 0x3e9   :  { %v302_v11 = vpop.f32.mrf.mxu3 }
 0x3ea   :  { %v303_v15 = vadd.f32 %v302_v11, %v259_v13 }
 0x3eb   :  { %v299_v14 = vpop.f32.mrf.mxu1 }
 0x3ec   :  { %v300_v19 = vadd.f32 %v299_v14, %v254_v18  ;;  %v310_v23 = vmax.f32 %v303_v15, 0.0 }
 0x3ee   :  { %v309_v24 = vmax.f32 %v300_v19, 0.0 }
 0x3f1   :  { %v305_v16 = vpop.f32.mrf.mxu3 }
 0x3f2   :  { %v306_v17 = vadd.f32 %v305_v16, %v264_v12 }
 0x3f4   :  { %v311_v20 = vmax.f32 %v306_v17, 0.0 }
 0x3f6   :  { %335 = vmatpush.msra.mxu2 %v311_v20 }
 0x3f8   :  { %336 = vmatpush.msra.mxu2 %v310_v23 }
 0x3fa   :  { %337 = vmatpush.msra.mxu2 %v309_v24 }
 0x3fc   :  { %338 = vmatpush.msra.mxu2 %v308_v25 }
 0x3fd   :  { %382 = vmatmul.msk.f32.vlgmr.msra.gmra.mxu2 %vm319_vm7, %v312_v26 }
 0x480   :  { %v340_v28 = vpop.f32.mrf.mxu2 }
 0x481   :  { %v341_v29 = vadd.f32 %v340_v28, %v317_v27 }
 0x483   :  { %344 = vst.msk [vmem:[#allocation5] sm:$0x3] %vm343_vm8, %v341_v29 }
 0x484   :  { %355 = dma.vmem_to_hbm [thread:$0]  %s351_s18, 32, %s353_s20, [#allocation4]  }
 0x485   :  { %456 = dma.done.wait [#allocation4], 32  }
 0x486   :  { %457 = vsyncadd [#allocation4], 4294967264 }
 0x487   :  { %360 = vsyncpa [#allocation3], 1 }
 0x488   :  { %361 = vsyncpa [#allocation4], 1 }

</bundles_post_ra>
